<compile_context>
chip_gen: v7x
topology: tpu7x:2x2x1
jax: 0.10.0
libtpu: 0.0.40
codegen_flags: <defaults>
</compile_context>

<pallas_src>
import functools
import math

import jax
import jax.numpy as jnp
from jax import lax
from jax.experimental import pallas as pl
from jax.experimental.pallas import tpu as pltpu


# ----------------------------------------------------------------------------
# Helpers
# ----------------------------------------------------------------------------
def _vmem_cap_bytes():
    # v7x has 64 MiB per TensorCore; v5e/v6e have 128 MiB.  Query when possible
    # so budgets adapt per generation (review: gate block sizes on v7x).
    try:
        return int(pltpu.get_tpu_info().vmem_capacity_bytes)
    except Exception:
        return 64 << 20                      # conservative default (v7x per-TC)


def _padded_block_bytes(shape, itemsize):
    """Bytes of one pipeline buffer for a block, including (8, 128) padding."""
    dims = [int(d) for d in shape] or [1]
    dims[-1] = ((dims[-1] + 127) // 128) * 128
    if len(dims) >= 2:
        dims[-2] = ((dims[-2] + 7) // 8) * 8
    n = 1
    for d in dims:
        n *= d
    return n * itemsize


def _vmem_limit(block_bytes, scratch_bytes=0):
    """Scoped VMEM budget (review): double-buffered pipeline blocks + persistent
    scratch + headroom, capped at 3/4 of physical VMEM so surrounding XLA
    fusions keep room on v7x's 64 MiB."""
    need = 2 * block_bytes + scratch_bytes + (4 << 20)
    return int(min((_vmem_cap_bytes() * 3) // 4, max(need, 16 << 20)))


def _pick_lane_width(hw, cg):
    """Pick a lane width L (multiple of 128, divides HW) so per-group blocks are
    lane-dense and the folded sublane dim Cg*(HW//L) is >= 8 when possible."""
    candidates = [lane for lane in (1024, 512, 256, 128) if hw % lane == 0]
    if not candidates:
        # TODO(synk): pad HW up to a 128 multiple for odd spatial sizes; for now
        # fall back to the full (possibly masked-store) row.
        return hw
    for lane in candidates:
        if cg * (hw // lane) >= 8:
            return lane
    return candidates[-1]


def _pick_tile(total, preferred):
    """Largest 128-multiple divisor of `total` <= preferred, else the full dim."""
    if total <= preferred:
        return total
    for t in range(preferred, 0, -1):
        if total % t == 0 and t % 128 == 0:
            return t
    return total


def _conv1x1(x, w, b):
    # Conv2d(c_in, c_out, 1): per-pixel channel matmul.  Left to XLA (header).
    return jnp.einsum("oc,nchw->nohw", w, x) + b[None, :, None, None]


def _layernorm(x, w, b, eps=1e-5):
    mu = x.mean(-1, keepdims=True)
    var = x.var(-1, keepdims=True)           # biased, matches torch LayerNorm
    return (x - mu) / jnp.sqrt(var + eps) * w + b


# ----------------------------------------------------------------------------
# Kernel 1: AdaGN (norm_dec) — group norm + conditioning affine
#   out = bias + group_norm(x) * (weight + 1)      (the "+1" is pre-folded)
# ----------------------------------------------------------------------------
def _adagn_kernel(x_ref, sb_ref, o_ref, *, eps, inv_count):
    x = x_ref[0].astype(jnp.float32)                       # (Gb, Rg, L)
    # One-pass statistics per group; clamped against cancellation.
    s = jnp.sum(jnp.sum(x, axis=2, keepdims=True), axis=1, keepdims=True)
    ss = jnp.sum(jnp.sum(x * x, axis=2, keepdims=True), axis=1, keepdims=True)
    mean = s * inv_count                                    # (Gb, 1, 1)
    var = jnp.maximum(ss * inv_count - mean * mean, 0.0)
    x_hat = (x - mean) * lax.rsqrt(var + eps)
    sb = sb_ref[0].astype(jnp.float32)                      # (Gb, Rg, 2)
    scale = sb[:, :, 0:1]                                   # weight + 1 (prefused)
    bias = sb[:, :, 1:2]
    o_ref[0] = (bias + x_hat * scale).astype(o_ref.dtype)


def adagn_forward(x, cond_feats, mapper_w, mapper_b, num_groups, eps=1e-5):
    """x: (N, C, H, W); cond_feats: (N, feats_in)."""
    N, C, H, W = x.shape
    G = num_groups
    assert C % G == 0, "channels must be divisible by num_groups"
    Cg = C // G
    HW = H * W

    # Tiny (N, F) @ (F, 2C) mapper GEMV stays in XLA; fold the "+1" here.
    wb = cond_feats.astype(jnp.float32) @ mapper_w + mapper_b       # (N, 2C)
    scale = wb[:, :C] + 1.0
    bias = wb[:, C:]

    # Fold HW so the lane dim is a 128-multiple; group stats are reshape-invariant.
    L = _pick_lane_width(HW, Cg)
    rpc = HW // L                          # rows per channel
    Rg = Cg * rpc                          # rows per group

    xg = x.reshape(N, G, Rg, L)
    # One combined (scale, bias) side array -> a single side DMA per grid step.
    sb = jnp.stack([scale, bias], axis=-1).reshape(N, G, Cg, 1, 2)
    sb = jnp.broadcast_to(sb, (N, G, Cg, rpc, 2)).reshape(N, G, Rg, 2)

    # Block several whole groups per step (amortizes per-step grid overhead)
    # while keeping the x block <= ~4 MiB so double-buffered in+out stays far
    # below even v7x's 64 MiB VMEM.
    group_bytes = Rg * L * x.dtype.itemsize
    Gb = 1
    for cand in range(G, 0, -1):
        if G % cand == 0 and cand * group_bytes <= (4 << 20):
            Gb = cand
            break
    # TODO(synk): if a single group alone exceeds the budget (huge C*HW on v7x),
    # split HW onto a trailing "arbitrary" grid axis with sum/sumsq scratch.

    block_bytes = (2 * _padded_block_bytes((Gb, Rg, L), x.dtype.itemsize)
                   + _padded_block_bytes((Gb, Rg, 2), 4))

    out = pl.pallas_call(
        functools.partial(_adagn_kernel, eps=eps, inv_count=1.0 / float(Cg * HW)),
        out_shape=jax.ShapeDtypeStruct((N, G, Rg, L), x.dtype),
        grid=(N, G // Gb),
        in_specs=[
            pl.BlockSpec((1, Gb, Rg, L), lambda n, g: (n, g, 0, 0)),
            pl.BlockSpec((1, Gb, Rg, 2), lambda n, g: (n, g, 0, 0)),
        ],
        out_specs=pl.BlockSpec((1, Gb, Rg, L), lambda n, g: (n, g, 0, 0)),
        compiler_params=pltpu.CompilerParams(
            dimension_semantics=("parallel", "parallel"),
            vmem_limit_bytes=_vmem_limit(block_bytes),
        ),
    )(xg, sb)
    return out.reshape(N, C, H, W)


# ----------------------------------------------------------------------------
# Kernel 2: cross attention.
# Transposed layout:
#   q_t : (N, nh, dh, Lq)  bf16     k   : (N, nh, S, dh)  bf16
#   v_t : (N, nh, dh, S)   bf16     bias: (N, S, 1)       f32 (per-key additive)
#   out : (N, nh, dh, Lq)  f32
# Per head:  s = k @ q_t  (S, tq);  softmax over keys (axis 0);
#            out = v_t @ p  (dh, tq)  -> lane-dense store, no transposes.
# ----------------------------------------------------------------------------
def _attn_one_pass_kernel(q_ref, k_ref, vt_ref, bias_ref, o_ref, *, scale):
    """Single kv pass (all keys fit one block): plain softmax, no running stats."""
    nh = q_ref.shape[1]
    bias = bias_ref[0]                                       # (S, 1) f32
    for h in range(nh):                                      # static unroll
        s = jnp.dot(k_ref[0, h], q_ref[0, h],
                    preferred_element_type=jnp.float32)      # (S, tq), bf16 MXU
        s = s * scale + bias
        m = jnp.max(s, axis=0, keepdims=True)                # (1, tq)
        p = jnp.exp(s - m)
        l = jnp.sum(p, axis=0, keepdims=True)                # (1, tq)
        acc = jnp.dot(vt_ref[0, h], p.astype(jnp.bfloat16),
                      preferred_element_type=jnp.float32)    # (dh, tq)
        o_ref[0, h] = (acc * pl.reciprocal(l, approx=True)).astype(o_ref.dtype)


def _attn_flash_kernel(q_ref, k_ref, vt_ref, bias_ref, o_ref,
                       m_sc, l_sc, acc_sc, *, scale):
    """Online-softmax path for long S (kv axis is the trailing grid axis)."""
    nh = q_ref.shape[1]
    ki = pl.program_id(2)

    @pl.when(ki == 0)
    def _():
        m_sc[...] = jnp.full(m_sc.shape, -jnp.inf, jnp.float32)
        l_sc[...] = jnp.zeros(l_sc.shape, jnp.float32)
        acc_sc[...] = jnp.zeros(acc_sc.shape, jnp.float32)

    bias = bias_ref[0]                                       # (tk, 1) f32
    for h in range(nh):
        s = jnp.dot(k_ref[0, h], q_ref[0, h],
                    preferred_element_type=jnp.float32)      # (tk, tq)
        s = s * scale + bias
        m_prev = m_sc[h]                                     # (1, tq)
        m_new = jnp.maximum(m_prev, jnp.max(s, axis=0, keepdims=True))
        alpha = jnp.exp(m_prev - m_new)
        p = jnp.exp(s - m_new)
        l_sc[h] = alpha * l_sc[h] + jnp.sum(p, axis=0, keepdims=True)
        acc_sc[h] = alpha * acc_sc[h] + jnp.dot(
            vt_ref[0, h], p.astype(jnp.bfloat16),
            preferred_element_type=jnp.float32)
        m_sc[h] = m_new

    @pl.when(ki == pl.num_programs(2) - 1)
    def _():
        for h in range(nh):
            o_ref[0, h] = (acc_sc[h] * pl.reciprocal(l_sc[h], approx=True)
                           ).astype(o_ref.dtype)


def cross_attention(q_t, k, v_t, bias, *, tq_pref=512, tk_pref=1024):
    N, nh, dh, Lq = q_t.shape
    S = k.shape[2]
    scale = 1.0 / math.sqrt(dh)
    tq = _pick_tile(Lq, tq_pref)
    out_shape = jax.ShapeDtypeStruct((N, nh, dh, Lq), jnp.float32)

    if S <= tk_pref or _pick_tile(S, tk_pref) == S:
        # ----- single kv pass (typical cross-attention: S is small) ---------
        block_bytes = (_padded_block_bytes((nh, dh, tq), 2)
                       + _padded_block_bytes((nh, S, dh), 2)
                       + _padded_block_bytes((nh, dh, S), 2)
                       + _padded_block_bytes((S, 1), 4)
                       + _padded_block_bytes((nh, dh, tq), 4))
        return pl.pallas_call(
            functools.partial(_attn_one_pass_kernel, scale=scale),
            out_shape=out_shape,
            grid=(N, Lq // tq),
            in_specs=[
                pl.BlockSpec((1, nh, dh, tq), lambda n, qi: (n, 0, 0, qi)),
                # K/V block index is constant across qi -> DMA'd once per batch.
                pl.BlockSpec((1, nh, S, dh), lambda n, qi: (n, 0, 0, 0)),
                pl.BlockSpec((1, nh, dh, S), lambda n, qi: (n, 0, 0, 0)),
                pl.BlockSpec((1, S, 1), lambda n, qi: (n, 0, 0)),
            ],
            out_specs=pl.BlockSpec((1, nh, dh, tq), lambda n, qi: (n, 0, 0, qi)),
            compiler_params=pltpu.CompilerParams(
                dimension_semantics=("parallel", "parallel"),
                vmem_limit_bytes=_vmem_limit(block_bytes),
            ),
        )(q_t, k, v_t, bias)

    # ----- long-S fallback: flash-style online softmax over kv tiles --------
    tk = _pick_tile(S, tk_pref)
    # TODO(synk): PrefetchScalarGridSpec with per-batch valid-KV length to skip
    # fully padded kv tiles instead of streaming them through the -1e4 bias.
    block_bytes = (_padded_block_bytes((nh, dh, tq), 2)
                   + _padded_block_bytes((nh, tk, dh), 2)
                   + _padded_block_bytes((nh, dh, tk), 2)
                   + _padded_block_bytes((tk, 1), 4)
                   + _padded_block_bytes((nh, dh, tq), 4))
    scratch_bytes = (2 * _padded_block_bytes((nh, 1, tq), 4)
                     + _padded_block_bytes((nh, dh, tq), 4))
    return pl.pallas_call(
        functools.partial(_attn_flash_kernel, scale=scale),
        out_shape=out_shape,
        grid=(N, Lq // tq, S // tk),
        in_specs=[
            pl.BlockSpec((1, nh, dh, tq), lambda n, qi, ki: (n, 0, 0, qi)),
            pl.BlockSpec((1, nh, tk, dh), lambda n, qi, ki: (n, 0, ki, 0)),
            pl.BlockSpec((1, nh, dh, tk), lambda n, qi, ki: (n, 0, 0, ki)),
            pl.BlockSpec((1, tk, 1), lambda n, qi, ki: (n, ki, 0)),
        ],
        out_specs=pl.BlockSpec((1, nh, dh, tq), lambda n, qi, ki: (n, 0, 0, qi)),
        scratch_shapes=[
            pltpu.VMEM((nh, 1, tq), jnp.float32),    # running max
            pltpu.VMEM((nh, 1, tq), jnp.float32),    # running denom
            pltpu.VMEM((nh, dh, tq), jnp.float32),   # output accumulator
        ],
        compiler_params=pltpu.CompilerParams(
            dimension_semantics=("parallel", "parallel", "arbitrary"),
            vmem_limit_bytes=_vmem_limit(block_bytes, scratch_bytes),
        ),
    )(q_t, k, v_t, bias)


# ----------------------------------------------------------------------------
# Full CrossAttention2d forward (Pallas kernels + XLA glue)
# ----------------------------------------------------------------------------
def cross_attention_2d_forward(x, cond, params, n_head, num_groups, eps=1e-5):
    N, C, H, W = x.shape
    assert C % n_head == 0
    dh = C // n_head
    HW = H * W

    # norm_dec = AdaGN (Pallas kernel 1)
    normed = adagn_forward(x, cond["cond"], params["mapper_w"], params["mapper_b"],
                           num_groups, eps)

    # q_proj (1x1 conv).  (N,C,H,W) -> (N, nh, dh, HW) is a pure reshape: the
    # attention kernel consumes q head-major, so no XLA transpose is needed.
    q = _conv1x1(normed, params["q_w"], params["q_b"])
    q_t = q.reshape(N, n_head, dh, HW).astype(jnp.bfloat16)

    # norm_enc + kv_proj (tiny, XLA), head split matching torch view/chunk.
    enc = _layernorm(cond["cross"].astype(jnp.float32), params["ln_w"], params["ln_b"])
    kv = enc @ params["kv_w"] + params["kv_b"]                     # (N, S, 2C)
    S = kv.shape[1]
    kv = kv.reshape(N, S, 2 * n_head, dh)
    k = kv[:, :, :n_head].transpose(0, 2, 1, 3).astype(jnp.bfloat16)    # (N,nh,S,dh)
    v_t = kv[:, :, n_head:].transpose(0, 2, 3, 1).astype(jnp.bfloat16)  # (N,nh,dh,S)

    # Additive padding bias (exactly the module's attn_mask), one value per key.
    attn_bias = (cond["cross_padding"].astype(jnp.float32) * -10000.0).reshape(N, S, 1)

    # Scaled-dot-product attention (Pallas kernel 2).  Output already arrives in
    # the (N, nh, dh, HW) layout that view-to-NCHW needs -> no transpose pass.
    # TODO(synk): attention dropout omitted (module default dropout_rate=0.0).
    y = cross_attention(q_t, k, v_t, attn_bias)                    # (N,nh,dh,HW) f32

    y = y.reshape(N, C, H, W)
    return x + _conv1x1(y, params["out_w"], params["out_b"])


# ----------------------------------------------------------------------------
# Pure-JAX reference (mirrors the PyTorch module; fully independent f32 math)
# ----------------------------------------------------------------------------
def cross_attention_2d_ref(x, cond, params, n_head, num_groups, eps=1e-5):
    N, C, H, W = x.shape
    dh = C // n_head
    HW = H * W

    wb = cond["cond"].astype(jnp.float32) @ params["mapper_w"] + params["mapper_b"]
    weight, bias = wb[:, :C], wb[:, C:]
    xg = x.reshape(N, num_groups, -1).astype(jnp.float32)
    mean = xg.mean(-1, keepdims=True)
    var = jnp.square(xg - mean).mean(-1, keepdims=True)
    x_hat = ((xg - mean) / jnp.sqrt(var + eps)).reshape(N, C, H, W)
    normed = bias[:, :, None, None] + x_hat * (weight[:, :, None, None] + 1.0)

    q = _conv1x1(normed, params["q_w"], params["q_b"])
    q = q.reshape(N, n_head, dh, HW).transpose(0, 1, 3, 2)

    enc = _layernorm(cond["cross"].astype(jnp.float32), params["ln_w"], params["ln_b"])
    kv = enc @ params["kv_w"] + params["kv_b"]
    S = kv.shape[1]
    kv = kv.reshape(N, S, 2 * n_head, dh).transpose(0, 2, 1, 3)
    k, v = kv[:, :n_head], kv[:, n_head:]

    attn_bias = cond["cross_padding"].astype(jnp.float32)[:, None, None, :] * -10000.0
    scores = jnp.einsum("nhqd,nhkd->nhqk", q, k) / math.sqrt(dh) + attn_bias
    p = jax.nn.softmax(scores, axis=-1)
    y = jnp.einsum("nhqk,nhkd->nhqd", p, v)
    y = y.transpose(0, 1, 3, 2).reshape(N, C, H, W)
    return x + _conv1x1(y, params["out_w"], params["out_b"])


if __name__ == "__main__":
    # Small shapes consistent with the module.
    N, c_dec, c_enc = 2, 32, 24
    H = W = 16
    S = 8
    n_head = 2
    feats_in = 8
    num_groups = 4
    eps = 1e-5

    key = jax.random.PRNGKey(0)
    keys = jax.random.split(key, 12)

    x = jax.random.normal(keys[0], (N, c_dec, H, W), dtype=jnp.float32)
    cond_feats = jax.random.normal(keys[1], (N, feats_in), dtype=jnp.float32)
    cross = jax.random.normal(keys[2], (N, S, c_enc), dtype=jnp.float32)
    # 1.0 = padded token (the module builds attn_mask = padding * -10000)
    cross_padding = jnp.zeros((N, S), jnp.float32).at[1, S - 2:].set(1.0)

    def rand(k, shape, scale=0.1):
        return scale * jax.random.normal(k, shape, dtype=jnp.float32)

    # The PyTorch module zero-inits out_proj (and k_diffusion zero-inits the
    # AdaGN mapper); small non-zero params here so every path is exercised.
    params = dict(
        mapper_w=rand(keys[3], (feats_in, 2 * c_dec)),
        mapper_b=rand(keys[4], (2 * c_dec,)),
        ln_w=1.0 + rand(keys[5], (c_enc,)),
        ln_b=rand(keys[6], (c_enc,)),
        q_w=rand(keys[7], (c_dec, c_dec)),
        q_b=rand(keys[8], (c_dec,)),
        kv_w=rand(keys[9], (c_enc, 2 * c_dec)),
        kv_b=rand(keys[10], (2 * c_dec,)),
        out_w=rand(keys[11], (c_dec, c_dec)),
        out_b=jnp.zeros((c_dec,), jnp.float32),
    )

    cond = {"cond": cond_feats, "cross": cross, "cross_padding": cross_padding}

    out = cross_attention_2d_forward(x, cond, params, n_head, num_groups, eps)
    out = jax.block_until_ready(out)

    ref = cross_attention_2d_ref(x, cond, params, n_head, num_groups, eps)
    assert out.shape == (N, c_dec, H, W)
    err = float(jnp.max(jnp.abs(out - ref)))
    # Tolerance accounts for bf16 MXU operands in the attention kernel
    # (reference is full f32); structural bugs show up as O(0.5+) errors.
    assert err < 6e-2, f"mismatch vs reference: {err}"
    assert bool(jnp.all(jnp.isfinite(out)))

    print("KERNEL_OK")
</pallas_src>

<mosaic_0001>
module attributes {stable_mosaic.version = 11 : i64} {
  func.func @_adagn_kernel(%arg0: i32, %arg1: i32, %arg2: memref<1x4x8x256xf32, #tpu.memory_space<vmem>>, %arg3: memref<1x4x8x2xf32, #tpu.memory_space<vmem>>, %arg4: memref<1x4x8x256xf32, #tpu.memory_space<vmem>>) attributes {dimension_semantics = [#tpu.dimension_semantics<parallel>, #tpu.dimension_semantics<parallel>], iteration_bounds = array<i64: 2, 1>, scalar_prefetch = 0 : i64, scratch_operands = 0 : i64, tpu.core_type = #tpu.core_type<tc>, window_params = [{transform_indices = @transform_0, window_bounds = array<i64: 1, 4, 8, 256>}, {transform_indices = @transform_1, window_bounds = array<i64: 1, 4, 8, 2>}, {transform_indices = @transform_2, window_bounds = array<i64: 1, 4, 8, 256>}]} {
    %c0 = arith.constant 0 : index
    %c0_0 = arith.constant 0 : index
    %c0_1 = arith.constant 0 : index
    %c0_2 = arith.constant 0 : index
    %0 = vector.load %arg2[%c0, %c0_0, %c0_1, %c0_2] : memref<1x4x8x256xf32, #tpu.memory_space<vmem>>, vector<1x4x8x256xf32>
    %1 = vector.shape_cast %0 : vector<1x4x8x256xf32> to vector<4x8x256xf32>
    %cst = arith.constant dense<0.000000e+00> : vector<4x8xf32>
    %2 = vector.multi_reduction <add>, %1, %cst [2] : vector<4x8x256xf32> to vector<4x8xf32>
    %3 = vector.shape_cast %2 : vector<4x8xf32> to vector<4x8x1xf32>
    %cst_3 = arith.constant dense<0.000000e+00> : vector<4x1xf32>
    %4 = vector.multi_reduction <add>, %3, %cst_3 [1] : vector<4x8x1xf32> to vector<4x1xf32>
    %5 = vector.shape_cast %4 : vector<4x1xf32> to vector<4x1x1xf32>
    %6 = arith.mulf %1, %1 : vector<4x8x256xf32>
    %cst_4 = arith.constant dense<0.000000e+00> : vector<4x8xf32>
    %7 = vector.multi_reduction <add>, %6, %cst_4 [2] : vector<4x8x256xf32> to vector<4x8xf32>
    %8 = vector.shape_cast %7 : vector<4x8xf32> to vector<4x8x1xf32>
    %cst_5 = arith.constant dense<0.000000e+00> : vector<4x1xf32>
    %9 = vector.multi_reduction <add>, %8, %cst_5 [1] : vector<4x8x1xf32> to vector<4x1xf32>
    %10 = vector.shape_cast %9 : vector<4x1xf32> to vector<4x1x1xf32>
    %cst_6 = arith.constant 4.8828125E-4 : f32
    %11 = vector.broadcast %cst_6 : f32 to vector<4x1x1xf32>
    %12 = arith.mulf %5, %11 : vector<4x1x1xf32>
    %cst_7 = arith.constant 4.8828125E-4 : f32
    %13 = vector.broadcast %cst_7 : f32 to vector<4x1x1xf32>
    %14 = arith.mulf %10, %13 : vector<4x1x1xf32>
    %15 = arith.mulf %12, %12 : vector<4x1x1xf32>
    %16 = arith.subf %14, %15 : vector<4x1x1xf32>
    %cst_8 = arith.constant 0.000000e+00 : f32
    %17 = vector.broadcast %cst_8 : f32 to vector<4x1x1xf32>
    %18 = arith.maximumf %16, %17 : vector<4x1x1xf32>
    %19 = vector.broadcast %12 : vector<4x1x1xf32> to vector<4x8x256xf32>
    %20 = arith.subf %1, %19 : vector<4x8x256xf32>
    %cst_9 = arith.constant 9.99999974E-6 : f32
    %21 = vector.broadcast %cst_9 : f32 to vector<4x1x1xf32>
    %22 = arith.addf %18, %21 : vector<4x1x1xf32>
    %23 = math.rsqrt %22 : vector<4x1x1xf32>
    %24 = vector.broadcast %23 : vector<4x1x1xf32> to vector<4x8x256xf32>
    %25 = arith.mulf %20, %24 : vector<4x8x256xf32>
    %c0_10 = arith.constant 0 : index
    %c0_11 = arith.constant 0 : index
    %c0_12 = arith.constant 0 : index
    %c0_13 = arith.constant 0 : index
    %26 = vector.load %arg3[%c0_10, %c0_11, %c0_12, %c0_13] : memref<1x4x8x2xf32, #tpu.memory_space<vmem>>, vector<1x4x8x2xf32>
    %27 = vector.shape_cast %26 : vector<1x4x8x2xf32> to vector<4x8x2xf32>
    %28 = vector.extract_strided_slice %27 {offsets = [0, 0, 0], sizes = [4, 8, 1], strides = [1, 1, 1]} : vector<4x8x2xf32> to vector<4x8x1xf32>
    %29 = vector.extract_strided_slice %27 {offsets = [0, 0, 1], sizes = [4, 8, 1], strides = [1, 1, 1]} : vector<4x8x2xf32> to vector<4x8x1xf32>
    %30 = vector.broadcast %28 : vector<4x8x1xf32> to vector<4x8x256xf32>
    %31 = arith.mulf %25, %30 : vector<4x8x256xf32>
    %32 = vector.broadcast %29 : vector<4x8x1xf32> to vector<4x8x256xf32>
    %33 = arith.addf %32, %31 : vector<4x8x256xf32>
    %c0_14 = arith.constant 0 : index
    %c0_15 = arith.constant 0 : index
    %c0_16 = arith.constant 0 : index
    %c0_17 = arith.constant 0 : index
    %34 = vector.load %arg4[%c0_14, %c0_15, %c0_16, %c0_17] : memref<1x4x8x256xf32, #tpu.memory_space<vmem>>, vector<1x4x8x256xf32>
    %35 = vector.shape_cast %34 : vector<1x4x8x256xf32> to vector<4x8x256xf32>
    %36 = vector.shape_cast %33 : vector<4x8x256xf32> to vector<1x4x8x256xf32>
    tpu.vector_store %arg4[%c0_14, %c0_15, %c0_16, %c0_17], %36 {strides = array<i32>} : memref<1x4x8x256xf32, #tpu.memory_space<vmem>>, vector<1x4x8x256xf32>,
    return
  }
  func.func @transform_0(%arg0: i32, %arg1: i32) -> (i32, i32, i32, i32) {
    %c0_i32 = arith.constant 0 : i32
    %c0_i32_0 = arith.constant 0 : i32
    %c0_i32_1 = arith.constant 0 : i32
    return %arg0, %arg1, %c0_i32, %c0_i32_0 : i32, i32, i32, i32
  }
  func.func @transform_1(%arg0: i32, %arg1: i32) -> (i32, i32, i32, i32) {
    %c0_i32 = arith.constant 0 : i32
    %c0_i32_0 = arith.constant 0 : i32
    %c0_i32_1 = arith.constant 0 : i32
    return %arg0, %arg1, %c0_i32, %c0_i32_0 : i32, i32, i32, i32
  }
  func.func @transform_2(%arg0: i32, %arg1: i32) -> (i32, i32, i32, i32) {
    %c0_i32 = arith.constant 0 : i32
    %c0_i32_0 = arith.constant 0 : i32
    %c0_i32_1 = arith.constant 0 : i32
    return %arg0, %arg1, %c0_i32, %c0_i32_0 : i32, i32, i32, i32
  }
}

</mosaic_0001>

<bundles_post_ra>
// kernel: tpu_custom_call.1
= control target key start
LH: loop header
LB: loop body
LE: loop exit
PB: predicated region body
PF: predicated region fallthrough
CT: control target
= control target key end

     0   :  { %7 = vsyncpa [#allocation3], 0  ;;  %s1010_s0 = inlined_call_operand.hbm [shape: f32[2,4,8,256], index: 0, kind: input, shape index: {}]   ;;  %s1011_s1 = inlined_call_operand.vmem [shape: f32[2,4,8,2], index: 1, kind: input, shape index: {}]   ;;  %s1012_s2 = inlined_call_operand.hbm [shape: f32[2,4,8,256], index: 2, kind: output, shape index: {}]  }
   0x1   :  { %9 = vsyncpa [#allocation3 + $0x1], 0 }
   0x2   :  { %10 = vsyncpa [#allocation4], 0 }
   0x3   :  { %12 = vsyncpa [#allocation4 + $0x1], 0  ;;  %s774_s9 = smov 0   ;;  %s776_s10 = smov 0  }
   0x4   :  { %s778_s11 = smov 0   ;;  %s780_s12 = smov 0  }
   0x5   :  { %s782_s13 = smov 0   ;;  %s784_s14 = smov 0  }
   0x6 LB: > { %s537_s15 = sadd.s32 4294967295, %s749_s14   ;;  %s538_s16 = sadd.s32 4294967294, %s749_s14   ;;  %s749_s14 = sphi %s784_s14, %s18_s14   ;;  %s745_s13 = sphi %s782_s13, %s1027_s13   ;;  %s741_s12 = sphi %s780_s12, %s1026_s12   ;;  %s737_s11 = sphi %s778_s11, %s1025_s11   ;;  %s733_s10 = sphi %s776_s10, %s1024_s10   ;;  %s729_s9 = sphi %s774_s9, %s1023_s9  }
   0x7   : > { %s30_s17 = sadd.s32 1, %s745_s13  ;;  %s39_s18 = sadd.s32 1, %s737_s11 }
   0x8   : > { %p32_p0 = scmp.ge.s32.totalorder %s30_s17, 2  ;;  %p46_p1 = scmp.ne.s32.totalorder %s737_s11, %s733_s10 }
   0x9   : > { %p47_p2 = scmp.eq.s32.totalorder %s749_s14, 0  ;;  %p52_p3 = scmp.ne.s32.totalorder %s733_s10, %s729_s9 }
   0xa   : > { %s1029_s17 = smov (%p32_p0, %s30_s17), 0  ;;  %p53_p5 = scmp.eq.s32.totalorder %s537_s15, 0 }
   0xb   : > { %p815_p4 = por %p47_p2, %p46_p1  ;;  %s34_s20 = ssub.s32 %s745_s13, %s1029_s17 }
   0xc   : > { %p106_p6 = scmp.eq.s32.totalorder %s537_s15, 1  ;;  %p37_p7 = scmp.eq.s32.totalorder %s34_s20, 0 }
   0xd   : > { %p821_p8 = por %p53_p5, %p52_p3  ;;  %p112_p10 = scmp.eq.s32.totalorder %s538_s16, 1 }
   0xe   : > { %p825_p9 = por %p106_p6, %p46_p1  ;;  %p569_p13 = scmp.lt.s32.totalorder %s749_s14, 2 }
   0xf   : > { %s830_s23 = scalar_select %p37_p7, %s737_s11, %s39_s18  }
  0x10   : > { %s1016_s22 = scalar_select %p825_p9, 1, 0 }
  0x11   : > { %p832_p11 = por %p112_p10, %p52_p3  ;;  %s132_s25 = sand.u32 1, %s737_s11  }
  0x12   : > { %s541_s26 = sshll.u32 %s132_s25, 6  ;;  %s554_s27 = sshll.u32 %s745_s13, 10 }
  0x13   : > { %s1017_s24 = scalar_select %p832_p11, 1, 0 }
  0x14   : > { %s843_s30 = scalar_lea.hbm %s1010_s0, %s554_s27  ;;  %s136_s3 = scalar_lea.vmem [#allocation2], %s541_s26 }
  0x15   : > { %s146_s4 = sshll.u32 %s136_s3, 4  ;;  %p849_p0 = pnand %p569_p13, %p815_p4  ;;  %s845_s4 = int_to_ptr.vmem [resolvable:$true] %s146_s4 }
  0x16   : > { %s854_s6 = scalar_lea.sflag [#allocation3], %s132_s25  ;;  %s637_s7 = scalar_lea.hbm %s843_s30, 1024 }
  0x17   : > { %p638_p2 = scmp.ne.s32.totalorder %s843_s30, %s637_s7  ;;  %p639_p3 = pneg %p849_p0 }
  0x18   : > { %s642_s16 = scalar_lea.hbm %s1010_s0, 2048  ;;  %p643_p4 = scmp.lt.u32.totalorder %s843_s30, %s1010_s0 }
  0x19   : > { %p640_p5 = pnand %p639_p3, %p638_p2  ;;  %p644_p7 = scmp.lt.u32.totalorder %s642_s16, %s637_s7 }
  0x1a   : > { %p646_p13 = scmp.lt.u32.totalorder %s637_s7, %s843_s30 }
  0x1b   : > { %p641_p6 = pneg %p640_p5  ;;  %p645_p10 = por %p644_p7, %p643_p4 }
  0x1d   : > { %p647_p12 = por %p646_p13, %p645_p10 }
  0x1f   : > { %p648_p1 = pnand %p647_p12, %p641_p6 }
  0x21   : > { %651 = shalt.err (!%p648_p1)
}
  0x22   : > { %s652_s20 = scalar_lea.vmem %s845_s4, 1024  ;;  %s751_s25 = smov [#allocation2]  }
  0x23   : > { %p653_p2 = scmp.ne.s32.totalorder %s845_s4, %s652_s20  ;;  %s657_s26 = sshll.u32 %s751_s25, 4  ;;  %s658_s26 = int_to_ptr.vmem [resolvable:$false] %s657_s26 }
  0x24   : > { %s659_s27 = scalar_lea.vmem %s658_s26, 2048  ;;  %p660_p9 = scmp.lt.s32.totalorder %s845_s4, %s658_s26 }
  0x25   : > { %p655_p5 = pnand %p653_p2, %p639_p3  ;;  %p661_p4 = scmp.lt.s32.totalorder %s659_s27, %s652_s20 }
  0x27   : > { %p656_p11 = pneg %p655_p5  ;;  %p662_p7 = por %p661_p4, %p660_p9 }
  0x29   : > { %p663_p10 = pnand %p662_p7, %p656_p11 }
  0x2b   : > { %666 = shalt.err (!%p663_p10)
}
  0x2c   : > { %s752_s28 = smov 256   ;;  %s753_s29 = smov 16  }
  0x2d   : > { %564 = dma.hbm_to_vmem [thread:$0]  (!%p849_p0), %s843_s30, 1024, %s845_s4, %s854_s6, %s752_s28, %s752_s28, %s753_s29  }
  0x2e   : > { %p167_p12 = scmp.lt.s32.totalorder %s749_s14, 3  ;;  %p1019_p1 = scmp.ge.s32.totalorder %s749_s14, 1 }
  0x30   : > { %p168_p3 = pnand %p1019_p1, %p167_p12 }
  0x31   : > { %s886_s3 = sand.u32 (!%p168_p3), 1, %s733_s10  }
  0x32   : > { %171 = sbr.rel (%p168_p3) target bundleno = 268 (0x10c), region = 28  ;;  %s545_s7 = sshll.u32 (!%p168_p3), %s886_s3, 6 }
  0x33   : > { %s174_s8 = scalar_lea.sflag (!%p168_p3), [#allocation3], %s886_s3  ;;  %s177_s15 = scalar_lea.vmem (!%p168_p3), [#allocation2], %s545_s7 }
  0x39   : > { %720 = dma.done.wait (%p821_p8), %s174_s8, 1024  }
  0x3a   : > { %722 = vsyncadd (%p821_p8), %s174_s8, 4294966272  ;;  %v754_v0 = vmov 0   ;;  %v896_v1 = vld [vmem:[%s177_s15 + $0x20] sm:$0xff]  ;;  %v898_v2 = vld [vmem:[%s177_s15 + $0x28] sm:$0xff]  ;;  %p209_p8 = scmp.lt.s32.totalorder %s741_s12, 1  ;;  %v755_v29 = vmov 1  }
  0x3b   : > { %626 = vset.pattern.permute.xlu1 %v754_v0  ;;  %625 = vset.pattern.permute.xlu0 %v754_v0  ;;  %v900_v3 = vld [vmem:[%s177_s15] sm:$0xff]  ;;  %v233_v4 = vadd.f32 %v898_v2, %v896_v1  ;;  %v904_v5 = vld [vmem:[%s177_s15 + $0x8] sm:$0xff]  ;;  %v906_v6 = vld [vmem:[%s177_s15 + $0x30] sm:$0xff]  ;;  %v267_v21 = vmul.f32 %v896_v1, %v896_v1  ;;  %v268_v22 = vmul.f32 %v898_v2, %v898_v2  ;;  %s206_s16 = scalar_lea.vmem [#allocation5], %s545_s7  ;;  %s556_s19 = sshll.u32 %s741_s12, 10 }
  0x3c   : > { %v908_v7 = vld [vmem:[%s177_s15 + $0x38] sm:$0xff]  ;;  %v227_v8 = vadd.f32 %v904_v5, %v900_v3  ;;  %v912_v9 = vld [vmem:[%s177_s15 + $0x10] sm:$0xff]  ;;  %v263_v15 = vmul.f32 %v900_v3, %v900_v3  ;;  %v264_v16 = vmul.f32 %v904_v5, %v904_v5  ;;  %v269_v18 = vmul.f32 %v906_v6, %v906_v6  ;;  %s210_s21 = scalar_select %p209_p8, %s741_s12, 1 }
  0x3d   : > { %v914_v10 = vld [vmem:[%s177_s15 + $0x18] sm:$0xff]  ;;  %234 = vadd.xlane.f32.xlu1 %v233_v4  ;;  %v236_v11 = vadd.f32 %v908_v7, %v906_v6  ;;  %v265_v12 = vmul.f32 %v912_v9, %v912_v9  ;;  %v270_v19 = vmul.f32 %v908_v7, %v908_v7  ;;  %v277_v24 = vadd.f32 %v268_v22, %v267_v21  ;;  %s432_s18 = sshll.u32 %s206_s16, 4  ;;  %s961_s25 = scalar_lea.hbm %s1012_s2, %s556_s19  ;;  %s956_s18 = int_to_ptr.vmem [resolvable:$true] %s432_s18 }
  0x3e   : > { %v266_v13 = vmul.f32 %v914_v10, %v914_v10  ;;  %228 = vadd.xlane.f32.xlu0 %v227_v8  ;;  %v230_v14 = vadd.f32 %v914_v10, %v912_v9  ;;  %v271_v20 = vadd.f32 %v264_v16, %v263_v15  ;;  %s555_s30 = sshll.u32 %s210_s21, 5  ;;  %s416_s26 = scalar_lea.sflag [#allocation4], %s886_s3 }
  0x3f   : > { %v280_v23 = vadd.f32 %v270_v19, %v269_v18  ;;  %s216_s6 = scalar_lea.vmem %s1011_s1, %s555_s30  ;;  %s667_s27 = scalar_lea.vmem %s956_s18, 1024 }
  0x40   : > { %v274_v17 = vadd.f32 %v266_v13, %v265_v12  ;;  %v352_v25 = vld [vmem:[%s216_s6 + $0x8] sm:$0xff]  ;;  %v353_v26 = vld [vmem:[%s216_s6 + $0x10] sm:$0xff]  ;;  %v354_v27 = vld [vmem:[%s216_s6 + $0x18] sm:$0xff]  ;;  %p668_p9 = scmp.ne.s32.totalorder %s956_s18, %s667_s27  ;;  %p1020_p11 = scmp.ne.s32.totalorder %s1016_s22, 0 }
  0x41   : > { %237 = vadd.xlane.f32.xlu1 %v236_v11  ;;  %v351_v28 = vld [vmem:[%s216_s6] sm:$0xff]  ;;  %s756_s28 = smov [#allocation5]  }
  0x42   : > { %231 = vadd.xlane.f32.xlu0 %v230_v14  ;;  %p669_p0 = pnand %p668_p9, %p1020_p11  ;;  %s671_s29 = sshll.u32 %s756_s28, 4  ;;  %s672_s29 = int_to_ptr.vmem [resolvable:$false] %s671_s29 }
  0x43   : > { %s673_s7 = scalar_lea.vmem %s672_s29, 2048  ;;  %p674_p13 = scmp.lt.s32.totalorder %s956_s18, %s672_s29 }
  0x44   : > { %p670_p6 = pneg %p669_p0  ;;  %p675_p2 = scmp.lt.s32.totalorder %s673_s7, %s667_s27 }
  0x45   : > { %275 = vadd.xlane.f32.xlu1 %v274_v17 }
  0x46   : > { %272 = vadd.xlane.f32.xlu0 %v271_v20  ;;  %p676_p5 = por %p675_p2, %p674_p13 }
  0x48   : > { %p677_p4 = pnand %p676_p5, %p670_p6 }
  0x49   : > { %281 = vadd.xlane.f32.xlu1 %v280_v23 }
  0x4a   : > { %278 = vadd.xlane.f32.xlu0 %v277_v24 }
  0x5a   : > { %362 = vperm.xlu1 %626, %v352_v25  }
  0x5e   : > { %367 = vperm.xlu1 %626, %v353_v26  }
  0x60   : > { %357 = vperm.xlu0 %625, %v351_v28  }
  0x62   : > { %372 = vperm.xlu1 %626, %v354_v27  }
  0x64   : > { %628 = vset.pattern.permute.xlu0 %v755_v29 }
  0x66   : > { %627 = vset.pattern.permute.xlu1 %v755_v29 }
  0x67   : > { %384 = vperm.xlu1 %627, %v351_v28  }
  0x6b   : > { %388 = vperm.xlu1 %627, %v352_v25  }
  0x6f   : > { %392 = vperm.xlu1 %627, %v353_v26  }
  0x73   : > { %396 = vperm.xlu1 %627, %v354_v27  }
  0xca   : > { %v235_v30 = vpop.xlane.xlu1 %234 }
  0xcb   : > { %v251_v31 = vrot.slane %v235_v30, 4  ;;  %v229_v32 = vpop.xlane.xlu0 %228 }
  0xcc   : > { %v239_v33 = vrot.slane %v229_v32, 4 }
  0xcd   : > { %v252_v34 = vadd.f32 %v251_v31, %v235_v30 }
  0xce   : > { %v240_v35 = vadd.f32 %v239_v33, %v229_v32  ;;  %v238_v36 = vpop.xlane.xlu1 %237 }
  0xcf   : > { %v253_v37 = vrot.slane %v252_v34, 2  ;;  %v257_v38 = vrot.slane %v238_v36, 4  ;;  %v232_v39 = vpop.xlane.xlu0 %231 }
  0xd0   : > { %v241_v40 = vrot.slane %v240_v35, 2  ;;  %v245_v41 = vrot.slane %v232_v39, 4 }
  0xd1   : > { %v258_v42 = vadd.f32 %v257_v38, %v238_v36  ;;  %v254_v46 = vadd.f32 %v253_v37, %v252_v34 }
  0xd2   : > { %v242_v43 = vadd.f32 %v241_v40, %v240_v35  ;;  %v246_v44 = vadd.f32 %v245_v41, %v232_v39  ;;  %v276_v45 = vpop.xlane.xlu1 %275 }
  0xd3   : > { %v259_v47 = vrot.slane %v258_v42, 2  ;;  %v289_v48 = vrot.slane %v276_v45, 4  ;;  %v273_v49 = vpop.xlane.xlu0 %272  ;;  %v255_v58 = vrot.slane %v254_v46, 1 }
  0xd4   : > { %v243_v50 = vrot.slane %v242_v43, 1  ;;  %v247_v51 = vrot.slane %v246_v44, 2  ;;  %v283_v52 = vrot.slane %v273_v49, 4 }
  0xd5   : > { %v260_v53 = vadd.f32 %v259_v47, %v258_v42  ;;  %v290_v54 = vadd.f32 %v289_v48, %v276_v45  ;;  %v256_v17 = vadd.f32 %v255_v58, %v254_v46 }
  0xd6   : > { %v248_v55 = vadd.f32 %v247_v51, %v246_v44  ;;  %v284_v56 = vadd.f32 %v283_v52, %v273_v49  ;;  %v282_v57 = vpop.xlane.xlu1 %281  ;;  %v244_v63 = vadd.f32 %v243_v50, %v242_v43 }
  0xd7   : > { %v261_v59 = vrot.slane %v260_v53, 1  ;;  %v291_v60 = vrot.slane %v290_v54, 2  ;;  %v301_v61 = vrot.slane %v282_v57, 4  ;;  %v279_v62 = vpop.xlane.xlu0 %278  ;;  %v309_v34 = vmul.f32 0.00048828125, %v256_v17 }
  0xd8   : > { %v249_v0 = vrot.slane %v248_v55, 1  ;;  %v285_v4 = vrot.slane %v284_v56, 2  ;;  %v295_v8 = vrot.slane %v279_v62, 4  ;;  %v307_v21 = vmul.f32 0.00048828125, %v244_v63 }
  0xd9   : > { %v292_v11 = vadd.f32 %v291_v60, %v290_v54  ;;  %v302_v12 = vadd.f32 %v301_v61, %v282_v57  ;;  %v262_v18 = vadd.f32 %v261_v59, %v260_v53  ;;  %v317_v47 = vmul.f32 %v309_v34, %v309_v34 }
  0xda   : > { %v250_v13 = vadd.f32 %v249_v0, %v248_v55  ;;  %v286_v14 = vadd.f32 %v285_v4, %v284_v56  ;;  %v296_v15 = vadd.f32 %v295_v8, %v279_v62  ;;  %v363_v16 = vpop.permute.xlu1 %362  ;;  %v315_v35 = vmul.f32 %v307_v21, %v307_v21 }
  0xdb   : > { %v293_v19 = vrot.slane %v292_v11, 1  ;;  %v303_v20 = vrot.slane %v302_v12, 2  ;;  %v310_v30 = vmul.f32 0.00048828125, %v262_v18  ;;  %v327_v62 = vsub.f32 %v900_v3, %v307_v21 }
  0xdc   : > { %v308_v22 = vmul.f32 0.00048828125, %v250_v13  ;;  %v287_v23 = vrot.slane %v286_v14, 1  ;;  %v297_v24 = vrot.slane %v296_v15, 2  ;;  %v328_v63 = vsub.f32 %v904_v5, %v307_v21 }
  0xdd   : > { %v294_v25 = vadd.f32 %v293_v19, %v292_v11  ;;  %v304_v26 = vadd.f32 %v303_v20, %v302_v12  ;;  %v318_v44 = vmul.f32 %v310_v30, %v310_v30  ;;  %v333_v18 = vsub.f32 %v906_v6, %v310_v30 }
  0xde   : > { %v288_v27 = vadd.f32 %v287_v23, %v286_v14  ;;  %v298_v28 = vadd.f32 %v297_v24, %v296_v15  ;;  %v941_v29 = vpop.permute.xlu1 %367  ;;  %v316_v32 = vmul.f32 %v308_v22, %v308_v22  ;;  %v329_v59 = vsub.f32 %v912_v9, %v308_v22 }
  0xdf   : > { %v312_v31 = vmul.f32 0.00048828125, %v294_v25  ;;  %v305_v33 = vrot.slane %v304_v26, 1  ;;  %v330_v60 = vsub.f32 %v914_v10, %v308_v22  ;;  %v358_v11 = vpop.permute.xlu0 %357  ;;  %v334_v9 = vsub.f32 %v908_v7, %v310_v30 }
  0xe0   : > { %v311_v36 = vmul.f32 0.00048828125, %v288_v27  ;;  %v299_v37 = vrot.slane %v298_v28, 1  ;;  %v331_v3 = vsub.f32 %v896_v1, %v309_v34  ;;  %v332_v5 = vsub.f32 %v898_v2, %v309_v34 }
  0xe1   : > { %v320_v38 = vsub.f32 %v312_v31, %v316_v32  ;;  %v306_v39 = vadd.f32 %v305_v33, %v304_v26 }
  0xe2   : > { %v319_v40 = vsub.f32 %v311_v36, %v315_v35  ;;  %v300_v41 = vadd.f32 %v299_v37, %v298_v28  ;;  %v373_v42 = vpop.permute.xlu1 %372 }
  0xe3   : > { %v324_v43 = vmax.f32 %v320_v38, 0.0  ;;  %v314_v45 = vmul.f32 0.00048828125, %v306_v39 }
  0xe4   : > { %v323_v46 = vmax.f32 %v319_v40, 0.0  ;;  %v313_v48 = vmul.f32 0.00048828125, %v300_v41 }
  0xe5   : > { %v336_v49 = vadd.f32 1e-05, %v324_v43  ;;  %v322_v50 = vsub.f32 %v314_v45, %v318_v44 }
  0xe6   : > { %v335_v51 = vadd.f32 1e-05, %v323_v46  ;;  %v321_v52 = vsub.f32 %v313_v48, %v317_v47  ;;  %v385_v54 = vpop.permute.xlu1 %384 }
  0xe7   : > { %629 = vrsqrt.f32 %v336_v49  ;;  %v326_v53 = vmax.f32 %v322_v50, 0.0 }
  0xe8   : > { %631 = vrsqrt.f32 %v335_v51  ;;  %v325_v55 = vmax.f32 %v321_v52, 0.0 }
  0xe9   : > { %v338_v56 = vadd.f32 1e-05, %v326_v53 }
  0xea   : > { %v337_v57 = vadd.f32 1e-05, %v325_v55  ;;  %v389_v58 = vpop.permute.xlu1 %388 }
  0xeb   : > { %633 = vrsqrt.f32 %v338_v56 }
  0xec   : > { %635 = vrsqrt.f32 %v337_v57 }
  0xee   : > { %v393_v12 = vpop.permute.xlu1 %392 }
  0xf1   : > { %v630_v61 = vpop.eup %629 }
  0xf2   : > { %v632_v0 = vpop.eup %631  ;;  %v345_v4 = vmul.f32 %v630_v61, %v329_v59  ;;  %v346_v8 = vmul.f32 %v630_v61, %v330_v60  ;;  %v397_v30 = vpop.permute.xlu1 %396 }
  0xf3   : > { %v343_v13 = vmul.f32 %v632_v0, %v327_v62  ;;  %v344_v14 = vmul.f32 %v632_v0, %v328_v63 }
  0xf4   : > { %v377_v15 = vmul.f32 %v363_v16, %v345_v4  ;;  %v378_v17 = vmul.f32 %v363_v16, %v346_v8 }
  0xf5   : > { %v634_v10 = vpop.eup %633  ;;  %v375_v19 = vmul.f32 %v358_v11, %v343_v13  ;;  %v376_v20 = vmul.f32 %v358_v11, %v344_v14 }
  0xf6   : > { %v636_v21 = vpop.eup %635  ;;  %v349_v22 = vmul.f32 %v634_v10, %v333_v18  ;;  %v350_v23 = vmul.f32 %v634_v10, %v334_v9  ;;  %v401_v24 = vadd.f32 %v389_v58, %v377_v15  ;;  %v402_v16 = vadd.f32 %v389_v58, %v378_v17 }
  0xf7   : > { %v347_v25 = vmul.f32 %v636_v21, %v331_v3  ;;  %v348_v6 = vmul.f32 %v636_v21, %v332_v5  ;;  %v399_v26 = vadd.f32 %v385_v54, %v375_v19  ;;  %v400_v7 = vadd.f32 %v385_v54, %v376_v20 }
  0xf8   : > { %v381_v27 = vmul.f32 %v373_v42, %v349_v22  ;;  %v382_v28 = vmul.f32 %v373_v42, %v350_v23  ;;  %409 = vst [vmem:[%s206_s16 + $0x10] sm:$0xff] %v401_v24  ;;  %410 = vst [vmem:[%s206_s16 + $0x18] sm:$0xff] %v402_v16 }
  0xf9   : > { %v379_v1 = vmul.f32 %v941_v29, %v347_v25  ;;  %v380_v2 = vmul.f32 %v941_v29, %v348_v6  ;;  %407 = vst [vmem:[%s206_s16] sm:$0xff] %v399_v26  ;;  %408 = vst [vmem:[%s206_s16 + $0x8] sm:$0xff] %v400_v7 }
  0xfa   : > { %v405_v31 = vadd.f32 %v397_v30, %v381_v27  ;;  %v406_v32 = vadd.f32 %v397_v30, %v382_v28 }
  0xfb   : > { %v403_v33 = vadd.f32 %v393_v12, %v379_v1  ;;  %v404_v34 = vadd.f32 %v393_v12, %v380_v2 }
  0xfc   : > { %413 = vst [vmem:[%s206_s16 + $0x30] sm:$0xff] %v405_v31  ;;  %414 = vst [vmem:[%s206_s16 + $0x38] sm:$0xff] %v406_v32 }
  0xfd   : > { %411 = vst [vmem:[%s206_s16 + $0x20] sm:$0xff] %v403_v33  ;;  %412 = vst [vmem:[%s206_s16 + $0x28] sm:$0xff] %v404_v34 }
  0xfe   : > { %680 = shalt.err (!%p677_p4)
}
  0xff   : > { %s681_s8 = scalar_lea.hbm %s961_s25, 1024  ;;  %s685_s30 = scalar_lea.hbm %s1012_s2, 2048 }
 0x100   : > { %p682_p7 = scmp.ne.s32.totalorder %s961_s25, %s681_s8  ;;  %p686_p1 = scmp.lt.u32.totalorder %s961_s25, %s1012_s2 }
 0x101   : > { %p687_p3 = scmp.lt.u32.totalorder %s685_s30, %s681_s8  ;;  %p689_p9 = scmp.lt.u32.totalorder %s681_s8, %s961_s25 }
 0x102   : > { %p683_p10 = pnand %p682_p7, %p1020_p11 }
 0x103   : > { %p688_p8 = por %p687_p3, %p686_p1 }
 0x104   : > { %p684_p12 = pneg %p683_p10 }
 0x105   : > { %p690_p0 = por %p689_p9, %p688_p8 }
 0x107   : > { %p691_p6 = pnand %p690_p0, %p684_p12 }
 0x109   : > { %694 = shalt.err (!%p691_p6)
}
 0x10a   : > { %s757_s6 = smov 256   ;;  %s758_s16 = smov 16  }
 0x10b   : > { %559 = dma.vmem_to_hbm [thread:$0]  (%p1020_p11), %s956_s18, 1024, %s961_s25, %s416_s26, %s757_s6, %s757_s6, %s758_s16  }
 0x10c PF: > { %s447_s19 = sand.u32 1, %s729_s9   ;;  %p1021_p13 = scmp.ne.s32.totalorder %s1017_s24, 0 }
 0x10d   : > { %p1022_p2 = scmp.ge.s32.totalorder %s749_s14, 2  ;;  %s448_s12 = scalar_lea.sflag [#allocation4], %s447_s19 }
 0x10f   : > { %p566_p5 = pnand %p1022_p2, %p1021_p13 }
 0x111   : > { %724 = dma.done.wait (!%p566_p5), %s448_s12, 1024  }
 0x112   : > { %726 = vsyncadd (!%p566_p5), %s448_s12, 4294966272  ;;  %s18_s14 = sadd.s32 1, %s749_s14   ;;  %s1023_s9 = smov %s733_s10 }
 0x113   : > { %p15_p4 = scmp.ge.s32.totalorder %s18_s14, 4   ;;  %s1024_s10 = smov %s737_s11 }
 0x114   : > { %s1025_s11 = smov %s830_s23  ;;  %s1026_s12 = smov %s745_s13 }
 0x115   : > { %s1027_s13 = smov %s1029_s17  ;;  %17 = sbr.rel (!%p15_p4) target bundleno = 6 (0x6), region = 76 }
 0x11c   :  { %453 = vsyncpa [#allocation3], 1 }
 0x11d   :  { %455 = vsyncpa [#allocation3 + $0x1], 1 }
 0x11e   :  { %456 = vsyncpa [#allocation4], 1 }
 0x11f   :  { %458 = vsyncpa [#allocation4 + $0x1], 1 }

</bundles_post_ra>
